<compile_context>
chip_gen: v7x
topology: tpu7x:2x2x1
jax: 0.10.0
libtpu: 0.0.40
codegen_flags: <defaults>
</compile_context>

<pallas_src>
import functools
import math
from types import SimpleNamespace

import numpy as np
import jax
import jax.numpy as jnp
from jax.experimental import pallas as pl
from jax.experimental.pallas import tpu as pltpu

LN_EPS = 1e-5
LANE = 128
SUBLANE = 8
MIN_ROW_TILE = 16                    # native bf16 sublane tile is (16, 128)
# Below this many output elements, pallas_call launch/pipeline overhead
# dominates and XLA's fused path wins outright.
DEFAULT_MIN_PALLAS_ELEMS = 1 << 20


def _round_up(x, m):
    return (x + m - 1) // m * m


@functools.lru_cache(maxsize=1)
def _vmem_limits():
    """Generation-aware VMEM sizing (v5e/v6e: 128 MiB physical, v7x: 64 MiB)."""
    phys = 64 * 1024 * 1024                       # conservative fallback (= v7x)
    try:
        info = pltpu.get_tpu_info()
        for attr in ("vmem_capacity_bytes", "vmem_size_bytes", "vmem_bytes"):
            val = getattr(info, attr, None)
            if val:
                phys = int(val)
                break
    except Exception:
        pass
    limit = (phys * 3) // 4                       # scoped VMEM limit we request
    budget = (limit * 2) // 3                     # working-set target (compiler headroom)
    return limit, budget


def _vmem_need_bytes(tm, K, hidden):
    """Per-step VMEM working-set estimate (internal lane/sublane padding included)."""
    k_lane = _round_up(K, LANE)
    h_lane = _round_up(hidden, LANE)
    k_sub = _round_up(K, 2 * SUBLANE)
    return (2 * tm * k_lane * 2          # bf16 patch block, double-buffered
            + 2 * k_sub * h_lane * 2     # bf16 weight block (constant map; count x2 to be safe)
            + 2 * tm * h_lane * 4        # output block x2 (counted as f32 to be safe)
            + 3 * tm * h_lane * 4        # f32 matmul accumulator / LN temporaries
            + 4 * SUBLANE * h_lane)      # packed bias/gamma/beta


def _pick_row_tile(n_rows, K, hidden, budget):
    """Largest row tile under the VMEM budget; >=2 grid steps when rows allow
    (so the 'parallel' axis can shard across v7x's two TensorCores)."""
    if n_rows < MIN_ROW_TILE:
        # Tiny inputs: a single block.  Full-extent blocks are legal even when
        # the row count is not 8-aligned; otherwise round down to the sublane
        # and let the ragged tail be masked on store.
        return n_rows if n_rows < SUBLANE else (n_rows // SUBLANE) * SUBLANE
    cap = (n_rows // SUBLANE) * SUBLANE
    tm = MIN_ROW_TILE
    for cand in (1024, 512, 256, 128, 64, 32, 16):
        if cand > cap:
            continue
        if _vmem_need_bytes(cand, K, hidden) <= budget:
            tm = cand
            break
    # TODO(synk): add an "arbitrary" K grid axis + f32 VMEM accumulator for
    # extreme configs whose full-K weight block alone blows the VMEM budget,
    # instead of letting tm collapse toward MIN_ROW_TILE.
    if n_rows >= 2 * MIN_ROW_TILE and pl.cdiv(n_rows, tm) < 2:
        tm = min(tm, _round_up(pl.cdiv(n_rows, 2), MIN_ROW_TILE))
    return tm


def _patch_embed_ln_kernel(p_ref, w_ref, prm_ref, o_ref):
    # MXU matmul: bf16 operands, f32 accumulation.
    acc = jnp.dot(p_ref[...], w_ref[...], preferred_element_type=jnp.float32)
    acc = acc + prm_ref[0:1, :]                                  # conv bias (f32)
    # LayerNorm over the real (unpadded) hidden axis, all in f32.
    mean = jnp.mean(acc, axis=-1, keepdims=True)
    centered = acc - mean
    var = jnp.mean(centered * centered, axis=-1, keepdims=True)
    xn = centered * jax.lax.rsqrt(var + LN_EPS)
    # gamma / beta, then narrow to the output dtype (bf16 by default).
    o_ref[...] = (xn * prm_ref[1:2, :] + prm_ref[2:3, :]).astype(o_ref.dtype)


def _jnp_patch_embed_ln(patches, weight, params, out_dtype):
    """Fallback path for tiny problems: same math, plain XLA."""
    y = jnp.dot(patches, weight, preferred_element_type=jnp.float32) + params[0]
    mean = jnp.mean(y, axis=-1, keepdims=True)
    var = jnp.mean(jnp.square(y - mean), axis=-1, keepdims=True)
    y = (y - mean) * jax.lax.rsqrt(var + LN_EPS)
    return (y * params[1] + params[2]).astype(out_dtype)


def patch_embed_layernorm(patches, weight, params, *, out_dtype=jnp.bfloat16,
                          min_pallas_elems=DEFAULT_MIN_PALLAS_ELEMS):
    """patches: (N, K) bf16, weight: (K, hidden) bf16, params: (3, hidden) f32
    holding (bias, gamma, beta).  Returns LN(patches @ weight + bias) as
    (N, hidden) in `out_dtype`."""
    N, K = patches.shape
    hidden = weight.shape[1]

    if N * hidden < min_pallas_elems:
        return _jnp_patch_embed_ln(patches, weight, params, out_dtype)

    vmem_limit, vmem_budget = _vmem_limits()
    tm = _pick_row_tile(N, K, hidden, vmem_budget)
    grid = (pl.cdiv(N, tm),)

    out_bytes = np.dtype(out_dtype).itemsize
    cost = pl.CostEstimate(
        flops=2 * N * K * hidden + 10 * N * hidden,
        transcendentals=N,
        bytes_accessed=(N * K * 2 + K * hidden * 2 + 3 * hidden * 4
                        + N * hidden * out_bytes),
    )

    # Ragged last block: rows >= N of the patch tile read unspecified VMEM, but
    # the math is row-independent (matmul + per-row LN) and those rows are
    # masked on store, so the visible output is exact.
    return pl.pallas_call(
        _patch_embed_ln_kernel,
        out_shape=jax.ShapeDtypeStruct((N, hidden), out_dtype),
        grid=grid,
        in_specs=[
            # Patches come from the ONCE-materialized im2col matrix: each block
            # DMA is a contiguous (tm, K) slab (no fused gather-like producer).
            pl.BlockSpec((tm, K), lambda i: (i, 0)),
            pl.BlockSpec((K, hidden), lambda i: (0, 0)),   # weight, resident across steps
            pl.BlockSpec((3, hidden), lambda i: (0, 0)),   # packed bias/gamma/beta
        ],
        # Unpadded output block => no post-kernel [:N, :hidden] slice copy.
        out_specs=pl.BlockSpec((tm, hidden), lambda i: (i, 0)),
        compiler_params=pltpu.CompilerParams(
            dimension_semantics=("parallel",),
            vmem_limit_bytes=vmem_limit,
        ),
        cost_estimate=cost,
    )(patches, weight, params)


def extract_patches(x, pt, ph, pw):
    """x: (B, T, C, H, W) -> (N, K) with K ordered (c, kt, kh, kw)."""
    B, T, C, H, W = x.shape
    Tp, Hp, Wp = T // pt, H // ph, W // pw
    x = x.reshape(B, Tp, pt, C, Hp, ph, Wp, pw)
    x = x.transpose(0, 1, 4, 6, 3, 2, 5, 7)        # (B, Tp, Hp, Wp, C, pt, ph, pw)
    return x.reshape(B * Tp * Hp * Wp, C * pt * ph * pw), (B, Tp, Hp, Wp)


class CrossMultipleViewTokenizePallas:
    """Pallas port of CrossMultipleViewTokenize with deterministic synthetic params."""

    def __init__(self, view_configs, key, *, out_dtype=jnp.bfloat16,
                 min_pallas_elems=DEFAULT_MIN_PALLAS_ELEMS):
        self.view_configs = view_configs
        self.out_dtype = out_dtype
        self.min_pallas_elems = min_pallas_elems
        self.params = []
        for vi, cfg in enumerate(view_configs):
            hidden = cfg["hidden_size"][0]
            ph, pw, pt = cfg["patches"].size   # Conv3d kernel = (size[-1], size[0], size[1])
            kin = 3 * pt * ph * pw
            kw_key, kb_key = jax.random.split(jax.random.fold_in(key, vi))
            bound = 1.0 / math.sqrt(kin)
            conv_w = jax.random.uniform(
                kw_key, (hidden, 3, pt, ph, pw), jnp.float32, -bound, bound)
            conv_b = jax.random.uniform(
                kb_key, (hidden,), jnp.float32, -bound, bound)
            gamma = jnp.ones((hidden,), jnp.float32)     # nn.LayerNorm defaults
            beta = jnp.zeros((hidden,), jnp.float32)
            self.params.append(dict(
                conv_w=conv_w, conv_b=conv_b, gamma=gamma, beta=beta,
                pt=pt, ph=ph, pw=pw, hidden=hidden))
        # One jit over every view: launches are scheduled together and the
        # shared bf16 cast of x happens once.
        self._forward = jax.jit(self._forward_impl)

    def _forward_impl(self, x):
        xb = x.astype(jnp.bfloat16)          # stream bf16 operands to the MXU
        outputs = []
        for p in self.params:
            pt, ph, pw, hidden = p["pt"], p["ph"], p["pw"], p["hidden"]
            patches, (B, Tp, Hp, Wp) = extract_patches(xb, pt, ph, pw)
            # conv weight (hidden, 3, pt, ph, pw) -> (K, hidden), K = (c,kt,kh,kw)
            w2 = p["conv_w"].reshape(hidden, -1).T.astype(jnp.bfloat16)
            prm = jnp.stack([p["conv_b"], p["gamma"], p["beta"]]).astype(jnp.float32)
            out = patch_embed_layernorm(
                patches, w2, prm, out_dtype=self.out_dtype,
                min_pallas_elems=self.min_pallas_elems)
            outputs.append(out.reshape(B, Tp, Hp * Wp, hidden))
        return outputs

    def __call__(self, x):
        return self._forward(x)


def _reference_bf16(x, model):
    """Pure-JAX reference of the exact compute path (bf16 matmul, f32 LN)."""
    outs = []
    xb = x.astype(jnp.bfloat16)
    for p in model.params:
        pt, ph, pw, hidden = p["pt"], p["ph"], p["pw"], p["hidden"]
        patches, (B, Tp, Hp, Wp) = extract_patches(xb, pt, ph, pw)
        w2 = p["conv_w"].reshape(hidden, -1).T.astype(jnp.bfloat16)
        y = jnp.dot(patches, w2, preferred_element_type=jnp.float32) + p["conv_b"]
        mean = jnp.mean(y, axis=-1, keepdims=True)
        var = jnp.mean((y - mean) ** 2, axis=-1, keepdims=True)
        y = (y - mean) * jax.lax.rsqrt(var + LN_EPS)
        y = y * p["gamma"] + p["beta"]
        outs.append(y.reshape(B, Tp, Hp * Wp, hidden).astype(model.out_dtype))
    return outs


def _reference_conv_f32(x, model):
    """Full-f32 module semantics: Conv3d via conv_general_dilated + LayerNorm."""
    outs = []
    for p in model.params:
        pt, ph, pw, hidden = p["pt"], p["ph"], p["pw"], p["hidden"]
        xc = jnp.transpose(x, (0, 2, 1, 3, 4))       # b c t h w
        y = jax.lax.conv_general_dilated(
            xc, p["conv_w"], window_strides=(pt, ph, pw), padding="VALID",
            dimension_numbers=("NCDHW", "OIDHW", "NCDHW"))
        y = y + p["conv_b"][None, :, None, None, None]
        B, C, Tp, Hp, Wp = y.shape
        y = jnp.transpose(y, (0, 2, 3, 4, 1)).reshape(B, Tp, Hp * Wp, C)
        mean = jnp.mean(y, axis=-1, keepdims=True)
        var = jnp.mean((y - mean) ** 2, axis=-1, keepdims=True)
        y = (y - mean) * jax.lax.rsqrt(var + LN_EPS)
        y = y * p["gamma"] + p["beta"]
        outs.append(y)
    return outs


if __name__ == "__main__":
    key = jax.random.PRNGKey(0)
    kx, kparams = jax.random.split(key)

    # Small demo shapes: B=2, T=4, C=3 (fixed by the module), H=W=16.
    B, T, C, H, W = 2, 4, 3, 16, 16
    x = jax.random.normal(kx, (B, T, C, H, W), jnp.float32)

    view_configs = [
        {"hidden_size": [32], "patches": SimpleNamespace(size=(4, 4, 2))},
        {"hidden_size": [64], "patches": SimpleNamespace(size=(8, 8, 4))},
    ]

    # min_pallas_elems=0: force the Pallas path even at these tiny demo sizes
    # (the production default gates tiny problems to the plain-XLA fallback).
    model = CrossMultipleViewTokenizePallas(view_configs, kparams,
                                            min_pallas_elems=0)

    outs = model(x)
    outs = [jax.block_until_ready(o) for o in outs]

    # 1) Tight check against a pure-JAX implementation of the identical compute
    #    path (bf16 operands, f32 accumulation + LayerNorm, bf16 output).
    refs = _reference_bf16(x, model)
    for o, r in zip(outs, refs):
        assert o.shape == r.shape, (o.shape, r.shape)
        err = float(jnp.max(jnp.abs(o.astype(jnp.float32) - r.astype(jnp.float32))))
        assert err < 5e-2, err

    # 2) Loose check against full-f32 Conv3d + LayerNorm module semantics
    #    (tolerance covers the intentional bf16 streaming + bf16 output).
    refs32 = _reference_conv_f32(x, model)
    for o, r in zip(outs, refs32):
        assert o.shape == r.shape, (o.shape, r.shape)
        err = float(jnp.max(jnp.abs(o.astype(jnp.float32) - r)))
        assert err < 1e-1, err

    print("KERNEL_OK")
</pallas_src>

<mosaic_0001>
module attributes {stable_mosaic.version = 11 : i64} {
  func.func @_patch_embed_ln_kernel(%arg0: i32, %arg1: memref<8x768xbf16, #tpu.memory_space<vmem>>, %arg2: memref<768x64xbf16, #tpu.memory_space<vmem>>, %arg3: memref<3x64xf32, #tpu.memory_space<vmem>>, %arg4: memref<8x64xbf16, #tpu.memory_space<vmem>>) attributes {dimension_semantics = [#tpu.dimension_semantics<parallel>], iteration_bounds = array<i64: 1>, scalar_prefetch = 0 : i64, scratch_operands = 0 : i64, tpu.core_type = #tpu.core_type<tc>, window_params = [{transform_indices = @transform_0, window_bounds = array<i64: 8, 768>}, {pipeline_mode = #tpu.pipeline_mode<synchronous>, transform_indices = @transform_1, window_bounds = array<i64: 768, 64>}, {pipeline_mode = #tpu.pipeline_mode<synchronous>, transform_indices = @transform_2, window_bounds = array<i64: 3, 64>}, {transform_indices = @transform_3, window_bounds = array<i64: 8, 64>}]} {
    %c0 = arith.constant 0 : index
    %c0_0 = arith.constant 0 : index
    %0 = vector.load %arg1[%c0, %c0_0] : memref<8x768xbf16, #tpu.memory_space<vmem>>, vector<8x768xbf16>
    %c0_1 = arith.constant 0 : index
    %c0_2 = arith.constant 0 : index
    %1 = vector.load %arg2[%c0_1, %c0_2] : memref<768x64xbf16, #tpu.memory_space<vmem>>, vector<768x64xbf16>
    %cst = arith.constant dense<0.000000e+00> : vector<8x64xf32>
    %2 = tpu.matmul %0, %1, %cst {dimension_numbers = #tpu.dot_dimension_numbers<[1], [0], [0], [1], [0, 0, 1, 1], [], []>} : vector<8x768xbf16>, vector<768x64xbf16>, vector<8x64xf32> -> vector<8x64xf32>
    %c0_3 = arith.constant 0 : index
    %c0_4 = arith.constant 0 : index
    %3 = vector.load %arg3[%c0_3, %c0_4] : memref<3x64xf32, #tpu.memory_space<vmem>>, vector<1x64xf32>
    %4 = vector.broadcast %3 : vector<1x64xf32> to vector<8x64xf32>
    %5 = arith.addf %2, %4 : vector<8x64xf32>
    %cst_5 = arith.constant dense<0.000000e+00> : vector<8xf32>
    %6 = vector.multi_reduction <add>, %5, %cst_5 [1] : vector<8x64xf32> to vector<8xf32>
    %7 = vector.shape_cast %6 : vector<8xf32> to vector<8x1xf32>
    %cst_6 = arith.constant 6.400000e+01 : f32
    %8 = vector.broadcast %cst_6 : f32 to vector<8x1xf32>
    %9 = arith.divf %7, %8 : vector<8x1xf32>
    %10 = vector.broadcast %9 : vector<8x1xf32> to vector<8x64xf32>
    %11 = arith.subf %5, %10 : vector<8x64xf32>
    %12 = arith.mulf %11, %11 : vector<8x64xf32>
    %cst_7 = arith.constant dense<0.000000e+00> : vector<8xf32>
    %13 = vector.multi_reduction <add>, %12, %cst_7 [1] : vector<8x64xf32> to vector<8xf32>
    %14 = vector.shape_cast %13 : vector<8xf32> to vector<8x1xf32>
    %cst_8 = arith.constant 6.400000e+01 : f32
    %15 = vector.broadcast %cst_8 : f32 to vector<8x1xf32>
    %16 = arith.divf %14, %15 : vector<8x1xf32>
    %cst_9 = arith.constant 9.99999974E-6 : f32
    %17 = vector.broadcast %cst_9 : f32 to vector<8x1xf32>
    %18 = arith.addf %16, %17 : vector<8x1xf32>
    %19 = math.rsqrt %18 : vector<8x1xf32>
    %20 = vector.broadcast %19 : vector<8x1xf32> to vector<8x64xf32>
    %21 = arith.mulf %11, %20 : vector<8x64xf32>
    %c1 = arith.constant 1 : index
    %c0_10 = arith.constant 0 : index
    %22 = vector.load %arg3[%c1, %c0_10] : memref<3x64xf32, #tpu.memory_space<vmem>>, vector<1x64xf32>
    %23 = vector.broadcast %22 : vector<1x64xf32> to vector<8x64xf32>
    %24 = arith.mulf %21, %23 : vector<8x64xf32>
    %c2 = arith.constant 2 : index
    %c0_11 = arith.constant 0 : index
    %25 = vector.load %arg3[%c2, %c0_11] : memref<3x64xf32, #tpu.memory_space<vmem>>, vector<1x64xf32>
    %26 = vector.broadcast %25 : vector<1x64xf32> to vector<8x64xf32>
    %27 = arith.addf %24, %26 : vector<8x64xf32>
    %28 = arith.truncf %27 : vector<8x64xf32> to vector<8x64xbf16>
    %c0_12 = arith.constant 0 : index
    %c0_13 = arith.constant 0 : index
    %29 = vector.load %arg4[%c0_12, %c0_13] : memref<8x64xbf16, #tpu.memory_space<vmem>>, vector<8x64xbf16>
    tpu.vector_store %arg4[%c0_12, %c0_13], %28 {strides = array<i32>} : memref<8x64xbf16, #tpu.memory_space<vmem>>, vector<8x64xbf16>,
    return
  }
  func.func @transform_0(%arg0: i32) -> (i32, i32) {
    %c0_i32 = arith.constant 0 : i32
    %c0_i32_0 = arith.constant 0 : i32
    return %arg0, %c0_i32 : i32, i32
  }
  func.func @transform_1(%arg0: i32) -> (i32, i32) {
    %c0_i32 = arith.constant 0 : i32
    %c0_i32_0 = arith.constant 0 : i32
    %c0_i32_1 = arith.constant 0 : i32
    return %c0_i32, %c0_i32_0 : i32, i32
  }
  func.func @transform_2(%arg0: i32) -> (i32, i32) {
    %c0_i32 = arith.constant 0 : i32
    %c0_i32_0 = arith.constant 0 : i32
    %c0_i32_1 = arith.constant 0 : i32
    return %c0_i32, %c0_i32_0 : i32, i32
  }
  func.func @transform_3(%arg0: i32) -> (i32, i32) {
    %c0_i32 = arith.constant 0 : i32
    %c0_i32_0 = arith.constant 0 : i32
    return %arg0, %c0_i32 : i32, i32
  }
}

module attributes {stable_mosaic.version = 11 : i64} {
  func.func @_patch_embed_ln_kernel(%arg0: i32, %arg1: memref<32x96xbf16, #tpu.memory_space<vmem>>, %arg2: memref<96x32xbf16, #tpu.memory_space<vmem>>, %arg3: memref<3x32xf32, #tpu.memory_space<vmem>>, %arg4: memref<32x32xbf16, #tpu.memory_space<vmem>>) attributes {dimension_semantics = [#tpu.dimension_semantics<parallel>], iteration_bounds = array<i64: 2>, scalar_prefetch = 0 : i64, scratch_operands = 0 : i64, tpu.core_type = #tpu.core_type<tc>, window_params = [{transform_indices = @transform_0, window_bounds = array<i64: 32, 96>}, {pipeline_mode = #tpu.pipeline_mode<synchronous>, transform_indices = @transform_1, window_bounds = array<i64: 96, 32>}, {pipeline_mode = #tpu.pipeline_mode<synchronous>, transform_indices = @transform_2, window_bounds = array<i64: 3, 32>}, {transform_indices = @transform_3, window_bounds = array<i64: 32, 32>}]} {
    %c0 = arith.constant 0 : index
    %c0_0 = arith.constant 0 : index
    %0 = vector.load %arg1[%c0, %c0_0] : memref<32x96xbf16, #tpu.memory_space<vmem>>, vector<32x96xbf16>
    %c0_1 = arith.constant 0 : index
    %c0_2 = arith.constant 0 : index
    %1 = vector.load %arg2[%c0_1, %c0_2] : memref<96x32xbf16, #tpu.memory_space<vmem>>, vector<96x32xbf16>
    %cst = arith.constant dense<0.000000e+00> : vector<32x32xf32>
    %2 = tpu.matmul %0, %1, %cst {dimension_numbers = #tpu.dot_dimension_numbers<[1], [0], [0], [1], [0, 0, 1, 1], [], []>} : vector<32x96xbf16>, vector<96x32xbf16>, vector<32x32xf32> -> vector<32x32xf32>
    %c0_3 = arith.constant 0 : index
    %c0_4 = arith.constant 0 : index
    %3 = vector.load %arg3[%c0_3, %c0_4] : memref<3x32xf32, #tpu.memory_space<vmem>>, vector<1x32xf32>
    %4 = vector.broadcast %3 : vector<1x32xf32> to vector<32x32xf32>
    %5 = arith.addf %2, %4 : vector<32x32xf32>
    %cst_5 = arith.constant dense<0.000000e+00> : vector<32xf32>
    %6 = vector.multi_reduction <add>, %5, %cst_5 [1] : vector<32x32xf32> to vector<32xf32>
    %7 = vector.shape_cast %6 : vector<32xf32> to vector<32x1xf32>
    %cst_6 = arith.constant 3.200000e+01 : f32
    %8 = vector.broadcast %cst_6 : f32 to vector<32x1xf32>
    %9 = arith.divf %7, %8 : vector<32x1xf32>
    %10 = vector.broadcast %9 : vector<32x1xf32> to vector<32x32xf32>
    %11 = arith.subf %5, %10 : vector<32x32xf32>
    %12 = arith.mulf %11, %11 : vector<32x32xf32>
    %cst_7 = arith.constant dense<0.000000e+00> : vector<32xf32>
    %13 = vector.multi_reduction <add>, %12, %cst_7 [1] : vector<32x32xf32> to vector<32xf32>
    %14 = vector.shape_cast %13 : vector<32xf32> to vector<32x1xf32>
    %cst_8 = arith.constant 3.200000e+01 : f32
    %15 = vector.broadcast %cst_8 : f32 to vector<32x1xf32>
    %16 = arith.divf %14, %15 : vector<32x1xf32>
    %cst_9 = arith.constant 9.99999974E-6 : f32
    %17 = vector.broadcast %cst_9 : f32 to vector<32x1xf32>
    %18 = arith.addf %16, %17 : vector<32x1xf32>
    %19 = math.rsqrt %18 : vector<32x1xf32>
    %20 = vector.broadcast %19 : vector<32x1xf32> to vector<32x32xf32>
    %21 = arith.mulf %11, %20 : vector<32x32xf32>
    %c1 = arith.constant 1 : index
    %c0_10 = arith.constant 0 : index
    %22 = vector.load %arg3[%c1, %c0_10] : memref<3x32xf32, #tpu.memory_space<vmem>>, vector<1x32xf32>
    %23 = vector.broadcast %22 : vector<1x32xf32> to vector<32x32xf32>
    %24 = arith.mulf %21, %23 : vector<32x32xf32>
    %c2 = arith.constant 2 : index
    %c0_11 = arith.constant 0 : index
    %25 = vector.load %arg3[%c2, %c0_11] : memref<3x32xf32, #tpu.memory_space<vmem>>, vector<1x32xf32>
    %26 = vector.broadcast %25 : vector<1x32xf32> to vector<32x32xf32>
    %27 = arith.addf %24, %26 : vector<32x32xf32>
    %28 = arith.truncf %27 : vector<32x32xf32> to vector<32x32xbf16>
    %c0_12 = arith.constant 0 : index
    %c0_13 = arith.constant 0 : index
    %29 = vector.load %arg4[%c0_12, %c0_13] : memref<32x32xbf16, #tpu.memory_space<vmem>>, vector<32x32xbf16>
    tpu.vector_store %arg4[%c0_12, %c0_13], %28 {strides = array<i32>} : memref<32x32xbf16, #tpu.memory_space<vmem>>, vector<32x32xbf16>,
    return
  }
  func.func @transform_0(%arg0: i32) -> (i32, i32) {
    %c0_i32 = arith.constant 0 : i32
    %c0_i32_0 = arith.constant 0 : i32
    return %arg0, %c0_i32 : i32, i32
  }
  func.func @transform_1(%arg0: i32) -> (i32, i32) {
    %c0_i32 = arith.constant 0 : i32
    %c0_i32_0 = arith.constant 0 : i32
    %c0_i32_1 = arith.constant 0 : i32
    return %c0_i32, %c0_i32_0 : i32, i32
  }
  func.func @transform_2(%arg0: i32) -> (i32, i32) {
    %c0_i32 = arith.constant 0 : i32
    %c0_i32_0 = arith.constant 0 : i32
    %c0_i32_1 = arith.constant 0 : i32
    return %c0_i32, %c0_i32_0 : i32, i32
  }
  func.func @transform_3(%arg0: i32) -> (i32, i32) {
    %c0_i32 = arith.constant 0 : i32
    %c0_i32_0 = arith.constant 0 : i32
    return %arg0, %c0_i32 : i32, i32
  }
}

</mosaic_0001>

<bundles_post_ra>
// kernel: _forward_impl.2
= control target key start
LH: loop header
LB: loop body
LE: loop exit
PB: predicated region body
PF: predicated region fallthrough
CT: control target
= control target key end

     0   :  { %8 = vsyncpa [#allocation3], 0  ;;  %s814_s0 = inlined_call_operand.vmem [shape: bf16[64,96], index: 0, kind: input, shape index: {}]   ;;  %s815_s1 = inlined_call_operand.vmem [shape: bf16[96,32], index: 1, kind: input, shape index: {}]   ;;  %s816_s2 = inlined_call_operand.vmem [shape: f32[3,32], index: 2, kind: input, shape index: {}]   ;;  %s817_s3 = inlined_call_operand.hbm [shape: bf16[64,32], index: 3, kind: output, shape index: {}]  }
   0x1   :  { %10 = vsyncpa [#allocation3 + $0x1], 0  ;;  %s667_s12 = smov 0   ;;  %s669_s13 = smov 0  }
   0x2   :  { %s671_s14 = smov 0   ;;  %s673_s15 = smov 0  }
   0x3 LB: > { %s688_s16 = sadd.s32 4294967295, %s642_s15   ;;  %s465_s17 = sadd.s32 4294967294, %s642_s15   ;;  %s642_s15 = sphi %s673_s15, %s823_s15   ;;  %s638_s14 = sphi %s671_s14, %s822_s14   ;;  %s634_s13 = sphi %s669_s13, %s821_s13   ;;  %s630_s12 = sphi %s667_s12, %s820_s12  }
   0x4   : > { %s692_s18 = sadd.s32 1, %s642_s15   ;;  %s91_s19 = sadd.s32 1, %s638_s14 }
   0x5   : > { %s88_s20 = ssub.s32 %s642_s15, %s692_s18  ;;  %p101_p0 = scmp.ne.s32.totalorder %s638_s14, %s634_s13 }
   0x6   : > { %p89_p1 = scmp.eq.s32.totalorder %s88_s20, 0  ;;  %p102_p2 = scmp.eq.s32.totalorder %s688_s16, 1 }
   0x7   : > { %p107_p3 = scmp.ne.s32.totalorder %s634_s13, %s630_s12  ;;  %p108_p4 = scmp.eq.s32.totalorder %s465_s17, 1 }
   0x8   : > { %s703_s21 = scalar_select %p89_p1, %s638_s14, %s91_s19  }
   0x9   : > { %p705_p5 = por %p102_p2, %p101_p0  ;;  %p709_p6 = por %p108_p4, %p107_p3 }
   0xa   : > { %p468_p7 = scmp.ge.s32.totalorder %s642_s15, 1  ;;  %p141_p8 = scmp.lt.s32.totalorder %s642_s15, 3 }
   0xc   : > { %p142_p9 = pnand %p468_p7, %p141_p8 }
   0xd   : > { %v564_v0 = vld [vmem:[%s815_s1] sm:$0xff] (!%p142_p9)   ;;  %s470_s26 = sshll.u32 (!%p142_p9), %s688_s16, 2  ;;  %v565_v1 = vld [vmem:[%s815_s1 + $0x8] sm:$0xff] (!%p142_p9)   ;;  %v566_v2 = vld [vmem:[%s815_s1 + $0x10] sm:$0xff] (!%p142_p9)   ;;  %vm240_vm0 = vcmask (!%p142_p9), 785408   ;;  %vm296_vm1 = vcmask (!%p142_p9), 261120  }
   0xe   : > { %145 = sbr.rel (%p142_p9) target bundleno = 591 (0x24f), region = 32  ;;  %p166_p10 = scmp.lt.s32.totalorder (!%p142_p9), %s470_s26, 7  ;;  %507 = vmatprep.subr.bf16.mxu0 (!%p142_p9), %v564_v0  ;;  %v567_v4 = vld [vmem:[%s815_s1 + $0x18] sm:$0xff] (!%p142_p9)   ;;  %v568_v5 = vld [vmem:[%s815_s1 + $0x20] sm:$0xff] (!%p142_p9)   ;;  %v569_v6 = vld [vmem:[%s815_s1 + $0x28] sm:$0xff] (!%p142_p9)   ;;  %vm384_vm2 = vcmask (!%p142_p9), 257024  }
   0xf   : > { %508 = vmatpush3.bf16.msra.mxu0 (!%p142_p9), %v564_v0  ;;  %v472_v8 = vld [vmem:[%s816_s2] ss:$0 sm:$0xff] (!%p142_p9)  ;;  %v483_v54 = vld [vmem:[%s816_s2 + $0x1] ss:$0 sm:$0xff] (!%p142_p9)  ;;  %s162_s27 = sand.u32 (!%p142_p9), 1, %s634_s13   ;;  %s498_s5 = sshll.u32 (!%p142_p9), %s688_s16, 8 }
  0x10   : > { %509 = vmatprep.subr.bf16.mxu0 (!%p142_p9), %v565_v1  ;;  %v484_v56 = vld [vmem:[%s816_s2 + $0x2] ss:$0 sm:$0xff] (!%p142_p9)  ;;  %s469_s30 = sshll.u32 (!%p142_p9), %s162_s27, 4  ;;  %s766_s9 = scalar_lea.hbm (!%p142_p9), %s817_s3, %s498_s5 }
  0x11   : > { %s773_s16 = scalar_lea.sflag (!%p142_p9), [#allocation3], %s162_s27  ;;  %s644_s11 = smov (!%p142_p9), [#allocation2]  }
  0x12   : > { %s584_s17 = sshll.u32 (!%p142_p9), %s644_s11, 4  ;;  %s585_s17 = int_to_ptr.vmem [resolvable:$false] %s584_s17 }
  0x13   : > { %510 = vmatpush3.bf16.msra.mxu0 (!%p142_p9), %v565_v1  ;;  %s586_s19 = scalar_lea.vmem (!%p142_p9), %s585_s17, 512 }
  0x14   : > { %511 = vmatprep.subr.bf16.mxu0 (!%p142_p9), %v566_v2 }
  0x15   : > { %s825_s26 = smov (!%p166_p10, %s470_s26), 7 }
  0x16   : > { %s471_s4 = sshll.u32 %s825_s26, 2 }
  0x17   : > { %s169_s7 = scalar_lea.vmem %s814_s0, %s471_s4  ;;  %512 = vmatpush3.bf16.msra.mxu0 %v566_v2  ;;  %s164_s4 = scalar_lea.vmem [#allocation2], %s469_s30 }
  0x18   : > { %v570_v3 = vld [vmem:[%s169_s7] sm:$0xff]   ;;  %513 = vmatprep.subr.bf16.mxu0 %v567_v4  ;;  %v571_v7 = vld [vmem:[%s169_s7 + $0x8] sm:$0xff]   ;;  %s403_s6 = sshll.u32 %s164_s4, 4  ;;  %s768_s6 = int_to_ptr.vmem [resolvable:$true] %s403_s6 }
  0x19   : > { %519 = vmatprep.mubr.msk.bf16.mxu0 %vm240_vm0, %v570_v3  ;;  %s580_s10 = scalar_lea.vmem %s768_s6, 256  ;;  %p587_p0 = scmp.lt.s32.totalorder %s768_s6, %s585_s17 }
  0x1a   : > { %p581_p11 = scmp.ne.s32.totalorder %s768_s6, %s580_s10  ;;  %p588_p1 = scmp.lt.s32.totalorder %s586_s19, %s580_s10 }
  0x1b   : > { %514 = vmatpush3.bf16.msra.mxu0 %v567_v4 }
  0x1c   : > { %515 = vmatprep.subr.bf16.mxu0 %v568_v5  ;;  %p582_p12 = pnand %p581_p11, %p705_p5  ;;  %p589_p2 = por %p588_p1, %p587_p0 }
  0x1e   : > { %p583_p13 = pneg %p582_p12 }
  0x1f   : > { %516 = vmatpush3.bf16.msra.mxu0 %v568_v5 }
  0x20   : > { %517 = vmatprep.subr.bf16.mxu0 %v569_v6  ;;  %p590_p3 = pnand %p589_p2, %p583_p13 }
  0x23   : > { %518 = vmatpush3.bf16.msra.mxu0 %v569_v6 }
  0x26   : > { %520 = vmatmul.mubr.msk.bf16.vlgmr.msra.gmra.mrb[0].mxu0 %vm240_vm0, %v571_v7 }
  0xf9   : > { %v521_v9 = vpop.f32.mrb[0].mxu0 }
  0xfa   : > { %v290_v10 = vadd.f32 %v521_v9, %v472_v8  ;;  %v281_v11 = vpop.f32.mrb[1].mxu0 }
  0xfb   : > { %v282_v12 = vadd.f32 %v472_v8, %v281_v11  ;;  %v522_v13 = vpop.f32.mrb[2].mxu0 }
  0xfc   : > { %v293_v14 = vadd.f32 %v522_v13, %v472_v8  ;;  %v284_v15 = vpop.f32.mrb[3].mxu0  ;;  %v303_v16 = vsel %vm296_vm1, %v290_v10, 0.0 }
  0xfd   : > { %v285_v17 = vadd.f32 %v472_v8, %v284_v15  ;;  %304 = vadd.xlane.f32.xlu1 %v303_v16  ;;  %v297_v18 = vsel %vm296_vm1, %v282_v12, 0.0 }
  0xfe   : > { %298 = vadd.xlane.f32.xlu0 %v297_v18  ;;  %v306_v19 = vsel %vm296_vm1, %v293_v14, 0.0 }
  0xff   : > { %v300_v20 = vsel %vm296_vm1, %v285_v17, 0.0 }
 0x101   : > { %307 = vadd.xlane.f32.xlu1 %v306_v19 }
 0x102   : > { %301 = vadd.xlane.f32.xlu0 %v300_v20 }
 0x18a   : > { %v305_v21 = vpop.xlane.xlu1 %304 }
 0x18b   : > { %v312_v22 = vmul.f32 0.03125, %v305_v21  ;;  %v299_v23 = vpop.xlane.xlu0 %298 }
 0x18c   : > { %v310_v24 = vmul.f32 0.03125, %v299_v23 }
 0x18d   : > { %v316_v25 = vsub.f32 %v290_v10, %v312_v22 }
 0x18e   : > { %v314_v26 = vsub.f32 %v282_v12, %v310_v24  ;;  %v308_v27 = vpop.xlane.xlu1 %307 }
 0x18f   : > { %v313_v28 = vmul.f32 0.03125, %v308_v27  ;;  %v302_v29 = vpop.xlane.xlu0 %301  ;;  %v320_v35 = vmul.f32 %v316_v25, %v316_v25 }
 0x190   : > { %v311_v30 = vmul.f32 0.03125, %v302_v29  ;;  %v318_v31 = vmul.f32 %v314_v26, %v314_v26 }
 0x191   : > { %v317_v32 = vsub.f32 %v293_v14, %v313_v28  ;;  %v328_v37 = vsel %vm296_vm1, %v320_v35, 0.0 }
 0x192   : > { %v315_v33 = vsub.f32 %v285_v17, %v311_v30  ;;  %v322_v34 = vsel %vm296_vm1, %v318_v31, 0.0 }
 0x193   : > { %323 = vadd.xlane.f32.xlu0 %v322_v34  ;;  %v321_v39 = vmul.f32 %v317_v32, %v317_v32 }
 0x194   : > { %v319_v36 = vmul.f32 %v315_v33, %v315_v33 }
 0x195   : > { %v331_v40 = vsel %vm296_vm1, %v321_v39, 0.0 }
 0x196   : > { %v325_v38 = vsel %vm296_vm1, %v319_v36, 0.0 }
 0x197   : > { %329 = vadd.xlane.f32.xlu0 %v328_v37  ;;  %326 = vadd.xlane.f32.xlu1 %v325_v38 }
 0x19b   : > { %332 = vadd.xlane.f32.xlu1 %v331_v40 }
 0x220   : > { %v324_v41 = vpop.xlane.xlu0 %323 }
 0x221   : > { %v334_v42 = vmul.f32 0.03125, %v324_v41 }
 0x223   : > { %v338_v43 = vadd.f32 1e-05, %v334_v42 }
 0x224   : > { %v327_v44 = vpop.xlane.xlu1 %326  ;;  %v330_v45 = vpop.xlane.xlu0 %329 }
 0x225   : > { %572 = vrsqrt.f32 %v338_v43  ;;  %v335_v46 = vmul.f32 0.03125, %v327_v44  ;;  %v336_v47 = vmul.f32 0.03125, %v330_v45 }
 0x227   : > { %v339_v48 = vadd.f32 1e-05, %v335_v46  ;;  %v340_v49 = vadd.f32 1e-05, %v336_v47 }
 0x228   : > { %v333_v50 = vpop.xlane.xlu1 %332 }
 0x229   : > { %574 = vrsqrt.f32 %v339_v48  ;;  %v337_v51 = vmul.f32 0.03125, %v333_v50 }
 0x22a   : > { %576 = vrsqrt.f32 %v340_v49 }
 0x22b   : > { %v341_v52 = vadd.f32 1e-05, %v337_v51 }
 0x22d   : > { %578 = vrsqrt.f32 %v341_v52 }
 0x22f   : > { %v573_v53 = vpop.eup %572 }
 0x230   : > { %v346_v55 = vmul.f32 %v573_v53, %v314_v26 }
 0x232   : > { %v355_v57 = vmul.f32 %v483_v54, %v346_v55 }
 0x233   : > { %v575_v58 = vpop.eup %574 }
 0x234   : > { %v577_v59 = vpop.eup %576  ;;  %v364_v60 = vadd.f32 %v484_v56, %v355_v57  ;;  %v347_v61 = vmul.f32 %v575_v58, %v315_v33 }
 0x235   : > { %v348_v62 = vmul.f32 %v577_v59, %v316_v25 }
 0x236   : > { %v494_v63 = vpack.c.bf16 %v364_v60, %v364_v60  ;;  %v356_v0 = vmul.f32 %v483_v54, %v347_v61 }
 0x237   : > { %v579_v1 = vpop.eup %578  ;;  %v357_v2 = vmul.f32 %v483_v54, %v348_v62 }
 0x238   : > { %v365_v3 = vadd.f32 %v484_v56, %v356_v0  ;;  %v349_v4 = vmul.f32 %v579_v1, %v317_v32  ;;  %385 = vst.msk [vmem:[%s164_s4] sm:$0xf] %vm384_vm2, %v494_v63 }
 0x239   : > { %v366_v5 = vadd.f32 %v484_v56, %v357_v2 }
 0x23a   : > { %v495_v6 = vpack.c.bf16 %v365_v3, %v365_v3  ;;  %v358_v7 = vmul.f32 %v483_v54, %v349_v4 }
 0x23b   : > { %v496_v8 = vpack.c.bf16 %v366_v5, %v366_v5 }
 0x23c   : > { %v367_v9 = vadd.f32 %v484_v56, %v358_v7  ;;  %386 = vst.msk [vmem:[%s164_s4 + $0x4] sm:$0xf] %vm384_vm2, %v495_v6 }
 0x23d   : > { %387 = vst.msk [vmem:[%s164_s4 + $0x8] sm:$0xf] %vm384_vm2, %v496_v8 }
 0x23e   : > { %v497_v10 = vpack.c.bf16 %v367_v9, %v367_v9 }
 0x240   : > { %388 = vst.msk [vmem:[%s164_s4 + $0xc] sm:$0xf] %vm384_vm2, %v497_v10 }
 0x241   : > { %593 = shalt.err (!%p590_p3)
}
 0x242   : > { %s594_s20 = scalar_lea.hbm %s766_s9, 256  ;;  %s598_s26 = scalar_lea.hbm %s817_s3, 512 }
 0x243   : > { %p595_p4 = scmp.ne.s32.totalorder %s766_s9, %s594_s20  ;;  %p599_p9 = scmp.lt.u32.totalorder %s766_s9, %s817_s3 }
 0x244   : > { %p600_p10 = scmp.lt.u32.totalorder %s598_s26, %s594_s20  ;;  %p602_p12 = scmp.lt.u32.totalorder %s594_s20, %s766_s9 }
 0x245   : > { %p596_p7 = pnand %p595_p4, %p705_p5 }
 0x246   : > { %p601_p11 = por %p600_p10, %p599_p9 }
 0x247   : > { %p597_p8 = pneg %p596_p7 }
 0x248   : > { %p603_p13 = por %p602_p12, %p601_p11 }
 0x24a   : > { %p604_p0 = pnand %p603_p13, %p597_p8 }
 0x24c   : > { %607 = shalt.err (!%p604_p0)
}
 0x24d   : > { %s645_s29 = smov 64   ;;  %s646_s30 = smov 4  }
 0x24e   : > { %523 = dma.vmem_to_hbm [thread:$0]  (%p705_p5), %s768_s6, 256, %s766_s9, %s773_s16, %s645_s29, %s645_s29, %s646_s30  }
 0x24f PF: > { %p529_p1 = scmp.ge.s32.totalorder %s642_s15, 2  ;;  %s418_s4 = sand.u32 1, %s630_s12  }
 0x250   : > { %s419_s5 = scalar_lea.sflag [#allocation3], %s418_s4 }
 0x251   : > { %p526_p2 = pnand %p529_p1, %p709_p6 }
 0x253   : > { %625 = dma.done.wait (!%p526_p2), %s419_s5, 256  }
 0x254   : > { %627 = vsyncadd (!%p526_p2), %s419_s5, 4294967040  ;;  %p13_p3 = scmp.ge.s32.totalorder %s692_s18, 4   ;;  %s820_s12 = smov %s634_s13 }
 0x255   : > { %s821_s13 = smov %s638_s14  ;;  %s822_s14 = smov %s703_s21 }
 0x256   : > { %s823_s15 = smov %s692_s18  ;;  %15 = sbr.rel (!%p13_p3) target bundleno = 3 (0x3), region = 67 }
 0x25d   :  { %424 = vsyncpa [#allocation3], 1 }
 0x25e   :  { %426 = vsyncpa [#allocation3 + $0x1], 1 }

// kernel: _forward_impl.3
= control target key start
LH: loop header
LB: loop body
LE: loop exit
PB: predicated region body
PF: predicated region fallthrough
CT: control target
= control target key end

     0   :  { %s992_s0 = inlined_call_operand.vmem [shape: bf16[8,768], index: 0, kind: input, shape index: {}]   ;;  %s993_s1 = inlined_call_operand.vmem [shape: bf16[768,64], index: 1, kind: input, shape index: {}]   ;;  %s994_s2 = inlined_call_operand.vmem [shape: f32[3,64], index: 2, kind: input, shape index: {}]   ;;  %s995_s3 = inlined_call_operand.hbm [shape: bf16[8,64], index: 3, kind: output, shape index: {}]  }
   0x1   :  { %v717_v0 = vld [vmem:[%s993_s1 + $0x40] sm:$0xff]   ;;  %v721_v4 = vld [vmem:[%s993_s1 + $0x48] sm:$0xff]   ;;  %v725_v8 = vld [vmem:[%s993_s1 + $0x50] sm:$0xff]  }
   0x2   :  { %v718_v1 = vld [vmem:[%s993_s1] sm:$0xff]   ;;  %650 = vmatprep.subr.bf16.mxu0 %v717_v0  ;;  %v722_v5 = vld [vmem:[%s993_s1 + $0x8] sm:$0xff]   ;;  %v726_v9 = vld [vmem:[%s993_s1 + $0x10] sm:$0xff]  }
   0x3   :  { %v719_v2 = vld [vmem:[%s993_s1 + $0xc0] sm:$0xff]   ;;  %651 = vmatpush3.bf16.msra.mxu0 %v718_v1  ;;  %v723_v6 = vld [vmem:[%s993_s1 + $0xc8] sm:$0xff]   ;;  %v727_v10 = vld [vmem:[%s993_s1 + $0xd0] sm:$0xff]  }
   0x4   :  { %v720_v3 = vld [vmem:[%s993_s1 + $0x80] sm:$0xff]   ;;  %672 = vmatprep.subr.bf16.mxu1 %v719_v2  ;;  %652 = vmatprep.subr.bf16.mxu0 %v721_v4  ;;  %v724_v7 = vld [vmem:[%s993_s1 + $0x88] sm:$0xff]   ;;  %v728_v11 = vld [vmem:[%s993_s1 + $0x90] sm:$0xff]  }
   0x5   :  { %673 = vmatpush3.bf16.msra.mxu1 %v720_v3  ;;  %v729_v12 = vld [vmem:[%s993_s1 + $0x58] sm:$0xff]   ;;  %v733_v16 = vld [vmem:[%s993_s1 + $0x60] sm:$0xff]   ;;  %v737_v20 = vld [vmem:[%s993_s1 + $0x68] sm:$0xff]  }
   0x6   :  { %674 = vmatprep.subr.bf16.mxu1 %v723_v6  ;;  %v730_v13 = vld [vmem:[%s993_s1 + $0x18] sm:$0xff]   ;;  %v734_v17 = vld [vmem:[%s993_s1 + $0x20] sm:$0xff]   ;;  %v738_v21 = vld [vmem:[%s993_s1 + $0x28] sm:$0xff]  }
   0x7   :  { %653 = vmatpush3.bf16.msra.mxu0 %v722_v5  ;;  %v731_v14 = vld [vmem:[%s993_s1 + $0xd8] sm:$0xff]   ;;  %v735_v18 = vld [vmem:[%s993_s1 + $0xe0] sm:$0xff]   ;;  %v739_v22 = vld [vmem:[%s993_s1 + $0xe8] sm:$0xff]  }
   0x8   :  { %654 = vmatprep.subr.bf16.mxu0 %v725_v8  ;;  %v732_v15 = vld [vmem:[%s993_s1 + $0x98] sm:$0xff]   ;;  %v736_v19 = vld [vmem:[%s993_s1 + $0xa0] sm:$0xff]   ;;  %v740_v23 = vld [vmem:[%s993_s1 + $0xa8] sm:$0xff]  }
   0x9   :  { %675 = vmatpush3.bf16.msra.mxu1 %v724_v7  ;;  %v741_v24 = vld [vmem:[%s993_s1 + $0x70] sm:$0xff]   ;;  %v745_v28 = vld [vmem:[%s993_s1 + $0x78] sm:$0xff]   ;;  %v16_v31 = vld [vmem:[%s992_s0] sm:$0xff] }
   0xa   :  { %676 = vmatprep.subr.bf16.mxu1 %v727_v10  ;;  %v742_v25 = vld [vmem:[%s993_s1 + $0x30] sm:$0xff]   ;;  %v746_v29 = vld [vmem:[%s993_s1 + $0x38] sm:$0xff]   ;;  %v594_v32 = vcombine.low %v16_v31, %v16_v31  ;;  %v595_v33 = vcombine.high %v16_v31, %v16_v31  ;;  %v751_v35 = vld [vmem:[%s993_s1 + $0x140] sm:$0xff]  }
   0xb   :  { %655 = vmatpush3.bf16.msra.mxu0 %v726_v9  ;;  %v743_v26 = vld [vmem:[%s993_s1 + $0xf0] sm:$0xff]   ;;  %v747_v30 = vld [vmem:[%s993_s1 + $0xf8] sm:$0xff]   ;;  %v17_v36 = vld [vmem:[%s992_s0 + $0x8] sm:$0xff] }
   0xc   :  { %656 = vmatprep.subr.bf16.mxu0 %v729_v12  ;;  %v744_v27 = vld [vmem:[%s993_s1 + $0xb0] sm:$0xff]   ;;  %v750_v34 = vld [vmem:[%s993_s1 + $0xb8] sm:$0xff]   ;;  %461 = vmatprep.mubr.bf16.mxu0 %v595_v33  ;;  %v596_v37 = vcombine.low %v17_v36, %v17_v36  ;;  %v597_v38 = vcombine.high %v17_v36, %v17_v36  ;;  %v754_v39 = vld [vmem:[%s993_s1 + $0x100] sm:$0xff]  }
   0xd   :  { %677 = vmatpush3.bf16.msra.mxu1 %v728_v11  ;;  %v755_v40 = vld [vmem:[%s993_s1 + $0x148] sm:$0xff]   ;;  %v757_v42 = vld [vmem:[%s993_s1 + $0x150] sm:$0xff]   ;;  %v759_v44 = vld [vmem:[%s993_s1 + $0x158] sm:$0xff]  }
   0xe   :  { %678 = vmatprep.subr.bf16.mxu1 %v731_v14  ;;  %501 = vmatprep.mubr.bf16.mxu1 %v597_v38  ;;  %v756_v41 = vld [vmem:[%s993_s1 + $0x108] sm:$0xff]   ;;  %v758_v43 = vld [vmem:[%s993_s1 + $0x110] sm:$0xff]   ;;  %v760_v45 = vld [vmem:[%s993_s1 + $0x118] sm:$0xff]  }
   0xf   :  { %657 = vmatpush3.bf16.msra.mxu0 %v730_v13  ;;  %v761_v46 = vld [vmem:[%s993_s1 + $0x160] sm:$0xff]   ;;  %v18_v48 = vld [vmem:[%s992_s0 + $0x10] sm:$0xff]  ;;  %v763_v49 = vld [vmem:[%s993_s1 + $0x168] sm:$0xff]  }
  0x10   :  { %658 = vmatprep.subr.bf16.mxu0 %v733_v16  ;;  %v762_v47 = vld [vmem:[%s993_s1 + $0x120] sm:$0xff]   ;;  %v599_v50 = vcombine.high %v18_v48, %v18_v48 }
  0x11   :  { %679 = vmatpush3.bf16.msra.mxu1 %v732_v15 }
  0x12   :  { %680 = vmatprep.subr.bf16.mxu1 %v735_v18 }
  0x13   :  { %659 = vmatpush3.bf16.msra.mxu0 %v734_v17 }
  0x14   :  { %660 = vmatprep.subr.bf16.mxu0 %v737_v20 }
  0x15   :  { %681 = vmatpush3.bf16.msra.mxu1 %v736_v19 }
  0x16   :  { %682 = vmatprep.subr.bf16.mxu1 %v739_v22 }
  0x17   :  { %661 = vmatpush3.bf16.msra.mxu0 %v738_v21 }
  0x18   :  { %662 = vmatprep.subr.bf16.mxu0 %v741_v24 }
  0x19   :  { %683 = vmatpush3.bf16.msra.mxu1 %v740_v23 }
  0x1a   :  { %684 = vmatprep.subr.bf16.mxu1 %v743_v26 }
  0x1b   :  { %663 = vmatpush3.bf16.msra.mxu0 %v742_v25 }
  0x1c   :  { %664 = vmatprep.subr.bf16.mxu0 %v745_v28 }
  0x1d   :  { %685 = vmatpush3.bf16.msra.mxu1 %v744_v27 }
  0x1e   :  { %686 = vmatprep.subr.bf16.mxu1 %v747_v30 }
  0x1f   :  { %665 = vmatpush3.bf16.msra.mxu0 %v746_v29 }
  0x20   :  { %694 = vmatprep.subr.bf16.mxu0 %v751_v35 }
  0x21   :  { %687 = vmatpush3.bf16.msra.mxu1 %v750_v34 }
  0x22   :  { %462 = vmatmul.mubr.bf16.vlgmr.msra.gmra.mrb[0].mxu0 %v594_v32 }
  0x23   :  { %695 = vmatpush3.bf16.msra.mxu0 %v754_v39 }
  0x24   :  { %502 = vmatmul.mubr.bf16.vlgmr.msra.gmra.mrb[0].mxu1 %v596_v37  ;;  %696 = vmatprep.subr.bf16.mxu0 %v755_v40 }
  0x27   :  { %697 = vmatpush3.bf16.msra.mxu0 %v756_v41 }
  0x28   :  { %698 = vmatprep.subr.bf16.mxu0 %v757_v42 }
  0x2b   :  { %699 = vmatpush3.bf16.msra.mxu0 %v758_v43 }
  0x2c   :  { %700 = vmatprep.subr.bf16.mxu0 %v759_v44 }
  0x2f   :  { %701 = vmatpush3.bf16.msra.mxu0 %v760_v45 }
  0x30   :  { %702 = vmatprep.subr.bf16.mxu0 %v761_v46 }
  0x31   :  { %8 = vsyncpa [#allocation3], 0  ;;  %541 = vmatprep.mubr.bf16.mxu0 %v599_v50  ;;  %v764_v51 = vld [vmem:[%s993_s1 + $0x128] sm:$0xff]   ;;  %v765_v52 = vld [vmem:[%s993_s1 + $0x170] sm:$0xff]   ;;  %v598_v56 = vcombine.low %v18_v48, %v18_v48  ;;  %vm549_vm0 = vcmask 523264   ;;  %s797_s10 = smov [#allocation2]  }
  0x32   :  { %v766_v53 = vld [vmem:[%s993_s1 + $0x130] sm:$0xff]   ;;  %v767_v54 = vld [vmem:[%s993_s1 + $0x178] sm:$0xff]   ;;  %v593_v58 = vld [vmem:[%s994_s2] ss:$0 sm:$0xff]  ;;  %s585_s11 = sshll.u32 %s797_s10, 4  ;;  %vm577_vm1 = vcmask 519168   ;;  %s586_s11 = int_to_ptr.vmem [resolvable:$true] %s585_s11 }
  0x33   :  { %703 = vmatpush3.bf16.msra.mxu0 %v762_v47  ;;  %v768_v55 = vld [vmem:[%s993_s1 + $0x138] sm:$0xff]   ;;  %v648_v22 = vld [vmem:[%s994_s2 + $0x1] ss:$0 sm:$0xff]  ;;  %v649_v24 = vld [vmem:[%s994_s2 + $0x2] ss:$0 sm:$0xff]  ;;  %s773_s12 = scalar_lea.vmem %s586_s11, 64  ;;  %p778_p1 = scmp.lt.s32.totalorder %s586_s11, %s586_s11 }
  0x34   :  { %704 = vmatprep.subr.bf16.mxu0 %v763_v49  ;;  %p774_p0 = scmp.ne.s32.totalorder %s586_s11, %s773_s12  ;;  %p779_p2 = scmp.lt.s32.totalorder %s773_s12, %s773_s12 }
  0x36   :  { %p780_p3 = por %p779_p2, %p778_p1 }
  0x37   :  { %705 = vmatpush3.bf16.msra.mxu0 %v764_v51 }
  0x38   :  { %706 = vmatprep.subr.bf16.mxu0 %v765_v52  ;;  %p781_p4 = pnand %p780_p3, %p774_p0 }
  0x3b   :  { %707 = vmatpush3.bf16.msra.mxu0 %v766_v53 }
  0x3c   :  { %708 = vmatprep.subr.bf16.mxu0 %v767_v54 }
  0x3f   :  { %709 = vmatpush3.bf16.msra.mxu0 %v768_v55 }
  0x42   :  { %542 = vmatmul.mubr.bf16.vlgmr.msra.gmra.mrb[4].mxu0 %v598_v56 }
  0xf5   :  { %v666_v57 = vpop.f32.mrb[0].mxu0 }
  0xf6   :  { %v667_v59 = vpop.f32.mrb[1].mxu0 }
  0xf7   :  { %v668_v60 = vadd.f32 %v667_v59, %v666_v57  ;;  %v669_v61 = vpop.f32.mrb[2].mxu0  ;;  %v688_v62 = vpop.f32.mrb[0].mxu1 }
  0xf8   :  { %v670_v63 = vpop.f32.mrb[3].mxu0  ;;  %v689_v0 = vpop.f32.mrb[1].mxu1 }
  0xf9   :  { %v464_v1 = vadd.f32 %v668_v60, %v593_v58  ;;  %v690_v2 = vadd.f32 %v689_v0, %v688_v62  ;;  %v691_v3 = vpop.f32.mrb[2].mxu1 }
  0xfa   :  { %v692_v4 = vpop.f32.mrb[3].mxu1 }
  0xfb   :  { %v504_v5 = vadd.f32 %v690_v2, %v464_v1 }
 0x115   :  { %v710_v6 = vpop.f32.mrb[4].mxu0 }
 0x116   :  { %v711_v7 = vpop.f32.mrb[5].mxu0 }
 0x117   :  { %v712_v8 = vadd.f32 %v711_v7, %v710_v6  ;;  %v713_v9 = vpop.f32.mrb[6].mxu0 }
 0x118   :  { %v714_v10 = vpop.f32.mrb[7].mxu0 }
 0x119   :  { %v544_v11 = vadd.f32 %v712_v8, %v504_v5 }
 0x11b   :  { %v550_v12 = vsel %vm549_vm0, %v544_v11, 0.0 }
 0x11c   :  { %551 = vadd.xlane.f32.xlu0 %v550_v12 }
 0x1a9   :  { %v552_v13 = vpop.xlane.xlu0 %551 }
 0x1aa   :  { %v554_v14 = vmul.f32 0.015625, %v552_v13 }
 0x1ac   :  { %v555_v15 = vsub.f32 %v544_v11, %v554_v14 }
 0x1ae   :  { %v556_v16 = vmul.f32 %v555_v15, %v555_v15 }
 0x1b0   :  { %v557_v17 = vsel %vm549_vm0, %v556_v16, 0.0 }
 0x1b1   :  { %558 = vadd.xlane.f32.xlu0 %v557_v17 }
 0x23e   :  { %v559_v18 = vpop.xlane.xlu0 %558 }
 0x23f   :  { %v560_v19 = vmul.f32 0.015625, %v559_v18 }
 0x241   :  { %v561_v20 = vadd.f32 1e-05, %v560_v19 }
 0x243   :  { %771 = vrsqrt.f32 %v561_v20 }
 0x24d   :  { %v772_v21 = vpop.eup %771 }
 0x24e   :  { %v563_v23 = vmul.f32 %v772_v21, %v555_v15 }
 0x250   :  { %v569_v25 = vmul.f32 %v648_v22, %v563_v23 }
 0x252   :  { %v575_v26 = vadd.f32 %v649_v24, %v569_v25 }
 0x254   :  { %v576_v27 = vpack.c.bf16 %v575_v26, %v575_v26 }
 0x256   :  { %578 = vst.msk [vmem:[#allocation2] sm:$0xf] %vm577_vm1, %v576_v27 }
 0x257   :  { %784 = shalt.err (!%p781_p4)
}
 0x258   :  { %s785_s15 = scalar_lea.hbm %s995_s3, 64 }
 0x259   :  { %p786_p5 = scmp.ne.s32.totalorder %s995_s3, %s785_s15  ;;  %p789_p6 = scmp.lt.u32.totalorder %s785_s15, %s995_s3 }
 0x25b   :  { %p791_p7 = pnand %p789_p6, %p786_p5 }
 0x25d   :  { %794 = shalt.err (!%p791_p7)
}
 0x25e   :  { %588 = dma.vmem_to_hbm [thread:$0]  %s586_s11, 64, %s995_s3, [#allocation3]  }
 0x25f   :  { %795 = dma.done.wait [#allocation3], 64  }
 0x260   :  { %796 = vsyncadd [#allocation3], 4294967232 }
 0x261   :  { %592 = vsyncpa [#allocation3], 1 }

</bundles_post_ra>
